<compile_context>
chip_gen: v7x
topology: tpu7x:2x2x1
jax: 0.10.0
libtpu: 0.0.40
codegen_flags: <defaults>
</compile_context>

<pallas_src>
import functools

import jax
import jax.numpy as jnp
from jax import lax
from jax.experimental import pallas as pl
from jax.experimental.pallas import tpu as pltpu


def _round_up(n: int, m: int) -> int:
    return ((n + m - 1) // m) * m


def _softmax_topk_kernel(x_ref, w_ref, i_ref, *, top_k: int):
    """One grid step: a (tm, E) block of router logits.

    x_ref : (tm, E)  input logits (native dtype; cast to f32 here)
    w_ref : (tm, K)  output top-k softmax weights, float32
    i_ref : (tm, K)  output top-k expert indices, int32
    """
    x = x_ref[...].astype(jnp.float32)                 # (tm, E)
    tm, E = x.shape

    # --- numerically stable softmax pieces (no full-width normalization) ---
    m = jnp.max(x, axis=-1, keepdims=True)             # (tm, 1)  XLU
    p = jnp.exp(x - m)                                  # (tm, E)  EUP, max == 1.0
    denom = jnp.sum(p, axis=-1, keepdims=True)          # (tm, 1)  XLU

    # 1/denom on the EUP (approx) + two Newton refinements -> ~f32 accuracy,
    # applied later to only the K selected values.
    inv = pl.reciprocal(denom, approx=True)
    inv = inv * (2.0 - denom * inv)
    inv = inv * (2.0 - denom * inv)

    lane_idx = lax.broadcasted_iota(jnp.int32, (tm, E), 1)
    neg_inf = jnp.float32(-jnp.inf)

    vals = []
    idxs = []

    # k = 0: top-1 of exp(x - m) is exactly 1.0, its index is argmax(x).
    # Reuse the x == m comparison; skip one full E-wide max reduction.
    idx0 = jnp.min(jnp.where(x == m, lane_idx, E), axis=-1, keepdims=True)
    vals.append(jnp.ones((tm, 1), jnp.float32))
    idxs.append(idx0)
    if top_k > 1:
        p = jnp.where(lane_idx == idx0, neg_inf, p)

    # Remaining top-k rounds on the unnormalized p (same ordering as probs).
    for k in range(1, top_k):
        v = jnp.max(p, axis=-1, keepdims=True)                         # (tm, 1)
        idx = jnp.min(jnp.where(p == v, lane_idx, E), axis=-1,
                      keepdims=True)                                    # (tm, 1)
        vals.append(v)
        idxs.append(idx)
        if k + 1 < top_k:
            p = jnp.where(lane_idx == idx, neg_inf, p)

    # Single consolidated store per output (instead of K masked column stores).
    w_ref[...] = jnp.concatenate(vals, axis=-1) * inv
    i_ref[...] = jnp.concatenate(idxs, axis=-1)


def softmax_topk(x: jnp.ndarray, top_k: int, *, tm: int | None = None):
    """Pallas SoftmaxTopK: x [T, E] -> (weights [T, K] f32, ids [T, K] i32)."""
    T, E = x.shape
    assert top_k >= 1 and top_k <= E

    if tm is None:
        itemsize = jnp.dtype(x.dtype).itemsize
        # Large token tiles: per-grid-step overhead dominates at small tiles for
        # this mem-bound kernel. Budget ~8 MiB for (double-buffered input) +
        # (fp32 temps), safely inside the 16 MiB v5e scoped-VMEM default.
        budget = 8 << 20
        per_row = E * (2 * itemsize + 12)
        tm = min(4096, max(8, budget // per_row))
    tm = max(8, (tm // 8) * 8)
    # Don't over-tile past the (sublane-rounded) token count ...
    tm = min(tm, _round_up(T, 8))
    # ... and keep at least 2 grid steps when possible so both v7x TensorCores
    # receive work along the "parallel" axis.
    if T > 16:
        tm = min(tm, _round_up(pl.cdiv(T, 2), 8))
    tm = max(8, tm)

    grid = (pl.cdiv(T, tm),)   # ragged T: Pallas masks the tail block's writes
    kernel = functools.partial(_softmax_topk_kernel, top_k=top_k)

    w, i = pl.pallas_call(
        kernel,
        out_shape=(
            jax.ShapeDtypeStruct((T, top_k), jnp.float32),
            jax.ShapeDtypeStruct((T, top_k), jnp.int32),
        ),
        grid_spec=pltpu.PrefetchScalarGridSpec(
            num_scalar_prefetch=0,
            grid=grid,
            in_specs=[pl.BlockSpec((tm, E), lambda t: (t, 0))],
            out_specs=[
                pl.BlockSpec((tm, top_k), lambda t: (t, 0)),
                pl.BlockSpec((tm, top_k), lambda t: (t, 0)),
            ],
        ),
        compiler_params=pltpu.CompilerParams(
            dimension_semantics=("parallel",),
        ),
    )(x)
    return w, i


def _reference(x, top_k):
    probs = jax.nn.softmax(x.astype(jnp.float32), axis=-1)
    vals, ids = lax.top_k(probs, top_k)
    return vals, ids.astype(jnp.int32)


if __name__ == "__main__":
    # Small primary case: tokens x num_experts router logits.
    T, E, K = 8, 32, 2
    x = jax.random.normal(jax.random.PRNGKey(0), (T, E), dtype=jnp.float32)

    w, i = softmax_topk(x, K)
    jax.block_until_ready((w, i))

    w_ref, i_ref = _reference(x, K)
    assert jnp.allclose(w, w_ref, atol=1e-5, rtol=1e-5), "weights mismatch (f32)"
    assert jnp.array_equal(i, i_ref), "indices mismatch (f32)"

    # Ragged token count + native bf16 logits: exercises the cdiv tail block,
    # the multi-step parallel grid, and the in-kernel f32 cast path.
    T2, E2, K2 = 50, 64, 4
    x2 = jax.random.normal(jax.random.PRNGKey(1), (T2, E2), dtype=jnp.bfloat16)
    w2, i2 = softmax_topk(x2, K2)
    jax.block_until_ready((w2, i2))

    w2_ref, i2_ref = _reference(x2, K2)
    assert jnp.allclose(w2, w2_ref, atol=1e-5, rtol=1e-4), "weights mismatch (bf16)"
    assert jnp.array_equal(i2, i2_ref), "indices mismatch (bf16)"

    print("KERNEL_OK")
</pallas_src>

<mosaic_0001>
module attributes {stable_mosaic.version = 11 : i64} {
  func.func @_softmax_topk_kernel(%arg0: i32, %arg1: memref<8x32xf32, #tpu.memory_space<vmem>>, %arg2: memref<8x2xf32, #tpu.memory_space<vmem>>, %arg3: memref<8x2xi32, #tpu.memory_space<vmem>>) attributes {dimension_semantics = [#tpu.dimension_semantics<parallel>], iteration_bounds = array<i64: 1>, scalar_prefetch = 0 : i64, scratch_operands = 0 : i64, tpu.core_type = #tpu.core_type<tc>, window_params = [{transform_indices = @transform_0, window_bounds = array<i64: 8, 32>}, {transform_indices = @transform_1, window_bounds = array<i64: 8, 2>}, {transform_indices = @transform_2, window_bounds = array<i64: 8, 2>}]} {
    %c0 = arith.constant 0 : index
    %c0_0 = arith.constant 0 : index
    %0 = vector.load %arg1[%c0, %c0_0] : memref<8x32xf32, #tpu.memory_space<vmem>>, vector<8x32xf32>
    %cst = arith.constant dense<0xFF800000> : vector<8xf32>
    %1 = vector.multi_reduction <maximumf>, %0, %cst [1] : vector<8x32xf32> to vector<8xf32>
    %2 = vector.shape_cast %1 : vector<8xf32> to vector<8x1xf32>
    %3 = vector.broadcast %2 : vector<8x1xf32> to vector<8x32xf32>
    %4 = arith.subf %0, %3 : vector<8x32xf32>
    %5 = math.exp %4 : vector<8x32xf32>
    %cst_1 = arith.constant dense<0.000000e+00> : vector<8xf32>
    %6 = vector.multi_reduction <add>, %5, %cst_1 [1] : vector<8x32xf32> to vector<8xf32>
    %7 = vector.shape_cast %6 : vector<8xf32> to vector<8x1xf32>
    %8 = tpu.reciprocal %7 {approx = true} : vector<8x1xf32> -> vector<8x1xf32>
    %9 = arith.mulf %7, %8 : vector<8x1xf32>
    %cst_2 = arith.constant 2.000000e+00 : f32
    %10 = vector.broadcast %cst_2 : f32 to vector<8x1xf32>
    %11 = arith.subf %10, %9 : vector<8x1xf32>
    %12 = arith.mulf %8, %11 : vector<8x1xf32>
    %13 = arith.mulf %7, %12 : vector<8x1xf32>
    %cst_3 = arith.constant 2.000000e+00 : f32
    %14 = vector.broadcast %cst_3 : f32 to vector<8x1xf32>
    %15 = arith.subf %14, %13 : vector<8x1xf32>
    %16 = arith.mulf %12, %15 : vector<8x1xf32>
    %17 = tpu.iota {dimensions = array<i32: 1>} : vector<8x32xi32>
    %18 = vector.broadcast %2 : vector<8x1xf32> to vector<8x32xf32>
    %19 = arith.cmpf oeq, %0, %18 : vector<8x32xf32>
    %c32_i32 = arith.constant 32 : i32
    %20 = vector.broadcast %c32_i32 : i32 to vector<8x32xi32>
    %21 = arith.select %19, %17, %20 : vector<8x32xi1>, vector<8x32xi32>
    %cst_4 = arith.constant dense<2147483647> : vector<8xi32>
    %22 = vector.multi_reduction <minsi>, %21, %cst_4 [1] : vector<8x32xi32> to vector<8xi32>
    %23 = vector.shape_cast %22 : vector<8xi32> to vector<8x1xi32>
    %cst_5 = arith.constant 1.000000e+00 : f32
    %24 = vector.broadcast %cst_5 : f32 to vector<8x1xf32>
    %25 = vector.broadcast %23 : vector<8x1xi32> to vector<8x32xi32>
    %26 = arith.cmpi eq, %17, %25 : vector<8x32xi32>
    %cst_6 = arith.constant 0xFF800000 : f32
    %27 = vector.broadcast %cst_6 : f32 to vector<8x32xf32>
    %28 = arith.select %26, %27, %5 : vector<8x32xi1>, vector<8x32xf32>
    %cst_7 = arith.constant dense<0xFF800000> : vector<8xf32>
    %29 = vector.multi_reduction <maximumf>, %28, %cst_7 [1] : vector<8x32xf32> to vector<8xf32>
    %30 = vector.shape_cast %29 : vector<8xf32> to vector<8x1xf32>
    %31 = vector.broadcast %30 : vector<8x1xf32> to vector<8x32xf32>
    %32 = arith.cmpf oeq, %28, %31 : vector<8x32xf32>
    %c32_i32_8 = arith.constant 32 : i32
    %33 = vector.broadcast %c32_i32_8 : i32 to vector<8x32xi32>
    %34 = arith.select %32, %17, %33 : vector<8x32xi1>, vector<8x32xi32>
    %cst_9 = arith.constant dense<2147483647> : vector<8xi32>
    %35 = vector.multi_reduction <minsi>, %34, %cst_9 [1] : vector<8x32xi32> to vector<8xi32>
    %36 = vector.shape_cast %35 : vector<8xi32> to vector<8x1xi32>
    %37 = tpu.concatenate %24, %30 in 1 : vector<8x1xf32>, vector<8x1xf32> -> vector<8x2xf32>
    %38 = vector.broadcast %16 : vector<8x1xf32> to vector<8x2xf32>
    %39 = arith.mulf %37, %38 : vector<8x2xf32>
    %c0_10 = arith.constant 0 : index
    %c0_11 = arith.constant 0 : index
    %40 = vector.load %arg2[%c0_10, %c0_11] : memref<8x2xf32, #tpu.memory_space<vmem>>, vector<8x2xf32>
    tpu.vector_store %arg2[%c0_10, %c0_11], %39 {strides = array<i32>} : memref<8x2xf32, #tpu.memory_space<vmem>>, vector<8x2xf32>,
    %41 = tpu.concatenate %23, %36 in 1 : vector<8x1xi32>, vector<8x1xi32> -> vector<8x2xi32>
    %c0_12 = arith.constant 0 : index
    %c0_13 = arith.constant 0 : index
    %42 = vector.load %arg3[%c0_12, %c0_13] : memref<8x2xi32, #tpu.memory_space<vmem>>, vector<8x2xi32>
    tpu.vector_store %arg3[%c0_12, %c0_13], %41 {strides = array<i32>} : memref<8x2xi32, #tpu.memory_space<vmem>>, vector<8x2xi32>,
    return
  }
  func.func @transform_0(%arg0: i32) -> (i32, i32) {
    %c0_i32 = arith.constant 0 : i32
    %c0_i32_0 = arith.constant 0 : i32
    return %arg0, %c0_i32 : i32, i32
  }
  func.func @transform_1(%arg0: i32) -> (i32, i32) {
    %c0_i32 = arith.constant 0 : i32
    %c0_i32_0 = arith.constant 0 : i32
    return %arg0, %c0_i32 : i32, i32
  }
  func.func @transform_2(%arg0: i32) -> (i32, i32) {
    %c0_i32 = arith.constant 0 : i32
    %c0_i32_0 = arith.constant 0 : i32
    return %arg0, %c0_i32 : i32, i32
  }
}

</mosaic_0001>

<bundles_post_ra>
// kernel: tpu_custom_call.1
= control target key start
LH: loop header
LB: loop body
LE: loop exit
PB: predicated region body
PF: predicated region fallthrough
CT: control target
= control target key end

     0   :  { %8 = vsyncpa [#allocation3], 0  ;;  %s126_s9 = smov [#allocation2]   ;;  %s167_s0 = inlined_call_operand.hbm [shape: f32[8,32], index: 0, kind: input, shape index: {}]   ;;  %s168_s1 = inlined_call_operand.vmem [shape: f32[8,2], index: 1, kind: output, shape index: {0}]   ;;  %s169_s2 = inlined_call_operand.vmem [shape: s32[8,2], index: 2, kind: output, shape index: {1}]  }
   0x1   :  { %s15_s10 = sshll.u32 %s126_s9, 4  ;;  %s102_s13 = scalar_lea.hbm %s167_s0, 128  ;;  %s16_s10 = int_to_ptr.vmem [resolvable:$true] %s15_s10 }
   0x2   :  { %p103_p0 = scmp.ne.s32.totalorder %s167_s0, %s102_s13  ;;  %p106_p1 = scmp.lt.u32.totalorder %s102_s13, %s167_s0 }
   0x4   :  { %p108_p2 = pnand %p106_p1, %p103_p0 }
   0x6   :  { %111 = shalt.err (!%p108_p2)
}
   0x7   :  { %s112_s18 = scalar_lea.vmem %s16_s10, 128  ;;  %p117_p4 = scmp.lt.s32.totalorder %s16_s10, %s16_s10 }
   0x8   :  { %p113_p3 = scmp.ne.s32.totalorder %s16_s10, %s112_s18  ;;  %p118_p5 = scmp.lt.s32.totalorder %s112_s18, %s112_s18 }
   0xa   :  { %p119_p6 = por %p118_p5, %p117_p4 }
   0xc   :  { %p120_p7 = pnand %p119_p6, %p113_p3 }
   0xe   :  { %123 = shalt.err (!%p120_p7)
}
   0xf   :  { %18 = dma.hbm_to_vmem [thread:$0]  %s167_s0, 128, %s16_s10, [#allocation3]  }
  0x10   :  { %124 = dma.done.wait [#allocation3], 128  }
  0x11   :  { %125 = vsyncadd [#allocation3], 4294967168  ;;  %vm23_vm0 = vcmask 261120   ;;  %v22_v0 = vld [vmem:[#allocation2] sm:$0xff]  ;;  %v40_v2 = vlaneseq  ;;  %vm81_vm5 = vcmask 7168   ;;  %vm84_vm6 = vcmask 15360  }
  0x12   :  { %v24_v1 = vsel %vm23_vm0, %v22_v0, -inf }
  0x13   :  { %25 = vmax.xlane.f32.xlu0 %v24_v1  ;;  %v41_v3 = vand.u32 127, %v40_v2 }
  0xa0   :  { %v26_v4 = vpop.xlane.xlu0 %25 }
  0xa1   :  { %vm42_vm1 = vcmp.eq.f32.partialorder %v22_v0, %v26_v4  ;;  %v27_v13 = vsub.f32 %v22_v0, %v26_v4 }
  0xa2   :  { %v43_v5 = vsel %vm42_vm1, %v41_v3, 32 }
  0xa3   :  { %v44_v6 = vsel %vm23_vm0, %v43_v5, 2147483647  ;;  %v28_v14 = vmul.f32 1.442695, %v27_v13 }
  0xa4   :  { %v46_v7 = vshra.s32 %v44_v6, 16  ;;  %v45_v9 = vand.u32 65535, %v44_v6 }
  0xa5   :  { %98 = vpow2.f32 %v28_v14 }
  0xa6   :  { %v48_v8 = vcvt.s32.f32 %v46_v7  ;;  %v47_v11 = vcvt.s32.f32 %v45_v9 }
  0xa8   :  { %49 = vmin.xlane.f32.xlu0 %v48_v8 }
  0xaf   :  { %v99_v20 = vpop.eup %98 }
  0xb0   :  { %v30_v23 = vsel %vm23_vm0, %v99_v20, 0.0 }
 0x135   :  { %v50_v10 = vpop.xlane.xlu0 %49 }
 0x136   :  { %vm51_vm2 = vcmp.eq.f32.partialorder %v48_v8, %v50_v10  ;;  %v56_v15 = vcvt.f32.s32 %v50_v10 }
 0x137   :  { %v52_v12 = vsel %vm51_vm2, %v47_v11, inf }
 0x138   :  { %53 = vmin.xlane.f32.xlu1 %v52_v12  ;;  %v57_v17 = vshll.u32 %v56_v15, 16 }
 0x1c5   :  { %v54_v16 = vpop.xlane.xlu1 %53 }
 0x1c6   :  { %v55_v18 = vcvt.f32.s32 %v54_v16 }
 0x1c8   :  { %v58_v19 = vadd.s32 %v57_v17, %v55_v18 }
 0x1ca   :  { %vm59_vm3 = vcmp.eq.s32.totalorder %v41_v3, %v58_v19 }
 0x1cb   :  { %v60_v21 = vsel %vm59_vm3, -inf, %v99_v20 }
 0x1cc   :  { %v61_v22 = vsel %vm23_vm0, %v60_v21, -inf }
 0x1cd   :  { %62 = vmax.xlane.f32.xlu1 %v61_v22 }
 0x1d1   :  { %31 = vadd.xlane.f32.xlu1 %v30_v23 }
 0x25a   :  { %v63_v24 = vpop.xlane.xlu1 %62 }
 0x25b   :  { %vm64_vm4 = vcmp.eq.f32.partialorder %v60_v21, %v63_v24  ;;  %v82_v37 = vsel %vm81_vm5, 1.0, %v63_v24 }
 0x25c   :  { %v65_v25 = vsel %vm64_vm4, %v41_v3, 32 }
 0x25d   :  { %v66_v26 = vsel %vm23_vm0, %v65_v25, 2147483647 }
 0x25e   :  { %v32_v27 = vpop.xlane.xlu1 %31  ;;  %v68_v28 = vshra.s32 %v66_v26, 16  ;;  %v67_v39 = vand.u32 65535, %v66_v26 }
 0x25f   :  { %100 = vrcp.f32 %v32_v27 }
 0x260   :  { %v70_v29 = vcvt.s32.f32 %v68_v28  ;;  %v69_v41 = vcvt.s32.f32 %v67_v39 }
 0x262   :  { %71 = vmin.xlane.f32.xlu0 %v70_v29 }
 0x269   :  { %v101_v30 = vpop.eup %100 }
 0x26a   :  { %v34_v31 = vmul.f32 %v101_v30, %v32_v27 }
 0x26c   :  { %v35_v32 = vsub.f32 2.0, %v34_v31 }
 0x26e   :  { %v36_v33 = vmul.f32 %v101_v30, %v35_v32 }
 0x270   :  { %v37_v34 = vmul.f32 %v36_v33, %v32_v27 }
 0x272   :  { %v38_v35 = vsub.f32 2.0, %v37_v34 }
 0x274   :  { %v39_v36 = vmul.f32 %v38_v35, %v36_v33 }
 0x276   :  { %v83_v38 = vmul.f32 %v82_v37, %v39_v36 }
 0x278   :  { %85 = vst.msk [vmem:[%s168_s1] sm:$0xff] %vm84_vm6, %v83_v38 }
 0x2ef   :  { %v72_v40 = vpop.xlane.xlu0 %71 }
 0x2f0   :  { %vm73_vm7 = vcmp.eq.f32.partialorder %v70_v29, %v72_v40  ;;  %v78_v43 = vcvt.f32.s32 %v72_v40 }
 0x2f1   :  { %v74_v42 = vsel %vm73_vm7, %v69_v41, inf }
 0x2f2   :  { %75 = vmin.xlane.f32.xlu0 %v74_v42  ;;  %v79_v45 = vshll.u32 %v78_v43, 16 }
 0x37f   :  { %v76_v44 = vpop.xlane.xlu0 %75 }
 0x380   :  { %v77_v46 = vcvt.f32.s32 %v76_v44 }
 0x382   :  { %v80_v47 = vadd.s32 %v79_v45, %v77_v46 }
 0x384   :  { %v86_v48 = vsel %vm81_vm5, %v58_v19, %v80_v47 }
 0x385   :  { %87 = vst.msk [vmem:[%s169_s2] sm:$0xff] %vm84_vm6, %v86_v48 }
 0x386   :  { %96 = vsyncpa [#allocation3], 1 }

</bundles_post_ra>
